<compile_context>
chip_gen: v5e
topology: v5e:2x2
jax: 0.10.0
libtpu: 0.0.40
codegen_flags: <defaults>
</compile_context>

<pallas_src>
import jax
import jax.numpy as jnp
from jax.experimental import pallas as pl
from jax.experimental.pallas import tpu as pltpu


# ----------------------------------------------------------------------------
# helpers
# ----------------------------------------------------------------------------
def _round_up(x: int, m: int) -> int:
    return ((x + m - 1) // m) * m


def _spectral_sigma(w_mat, iters: int = 50):
    """Largest singular value via power iteration (converged spectral_norm sigma)."""
    u = jnp.ones((w_mat.shape[0],), jnp.float32)
    u = u / jnp.linalg.norm(u)
    v = None
    for _ in range(iters):
        v = w_mat.T @ u
        v = v / (jnp.linalg.norm(v) + 1e-12)
        u = w_mat @ v
        u = u / (jnp.linalg.norm(u) + 1e-12)
    return jnp.dot(u, w_mat @ v)


# ----------------------------------------------------------------------------
# Kernel 1: 1x1 conv (single MXU matmul) + bias + ReLU, tiled over M = N*H*W
# ----------------------------------------------------------------------------
def _conv1x1_relu_kernel(x_ref, w_ref, b_ref, o_ref):
    acc = jnp.dot(x_ref[...], w_ref[...], preferred_element_type=jnp.float32)
    acc = acc + b_ref[...]
    o_ref[...] = jnp.maximum(acc, 0.0).astype(o_ref.dtype)


def _conv1x1_relu(x_mc, w_ck, b_k, *, tile_m: int = 1024):
    """(M, Cin) @ (Cin, Cout) + bias, ReLU.  bf16 MXU operands, f32 accumulation."""
    m, cin = x_mc.shape
    cout = w_ck.shape[1]

    tm = min(tile_m, _round_up(m, 8))
    mp = _round_up(m, tm)
    if mp != m:
        x_mc = jnp.pad(x_mc, ((0, mp - m), (0, 0)))

    xb = x_mc.astype(jnp.bfloat16)
    wb = w_ck.astype(jnp.bfloat16)
    bf = b_k.reshape(1, cout).astype(jnp.float32)

    out = pl.pallas_call(
        _conv1x1_relu_kernel,
        out_shape=jax.ShapeDtypeStruct((mp, cout), jnp.float32),
        grid=(mp // tm,),
        in_specs=[
            pl.BlockSpec((tm, cin), lambda i: (i, 0)),        # activations: tiled over M
            pl.BlockSpec((cin, cout), lambda i: (0, 0)),      # weight: grid-invariant
            pl.BlockSpec((1, cout), lambda i: (0, 0)),        # bias: grid-invariant
        ],
        out_specs=pl.BlockSpec((tm, cout), lambda i: (i, 0)),
        compiler_params=pltpu.CompilerParams(
            dimension_semantics=("parallel",),
            vmem_limit_bytes=32 * 1024 * 1024,
        ),
    )(xb, wb, bf)
    return out[:m]


# ----------------------------------------------------------------------------
# Kernel 2: ReplicationPad2d((1,0,1,0)) + AvgPool2d(2, stride=1) on NHWC image
# ----------------------------------------------------------------------------
def _blur_kernel(cur_ref, above_ref, o_ref):
    t = cur_ref[0]                                              # (TH, W2, C)  ps[y, x]
    above = above_ref[0]                                        # (1,  W2, C)  ps[y0-1, x] (clamped)
    up = jnp.concatenate([above, t[:-1]], axis=0)               # ps[y-1, x]   (top-replicated)
    left = jnp.concatenate([t[:, :1], t[:, :-1]], axis=1)       # ps[y,   x-1] (left-replicated)
    uleft = jnp.concatenate([up[:, :1], up[:, :-1]], axis=1)    # ps[y-1, x-1]
    o_ref[0] = (0.25 * (t + up + left + uleft)).astype(o_ref.dtype)


def _pixelshuffle_blur(ps_nhwc, *, tile_h=None):
    n, h2, w2, c = ps_nhwc.shape
    if tile_h is None:
        tile_h = next((t for t in (128, 64, 32, 16, 8, 4, 2) if h2 % t == 0), h2)
    th = tile_h
    assert h2 % th == 0, "tile_h must divide the upsampled height"

    return pl.pallas_call(
        _blur_kernel,
        out_shape=jax.ShapeDtypeStruct((n, h2, w2, c), jnp.float32),
        grid=(n, h2 // th),
        in_specs=[
            # current row-block
            pl.BlockSpec((1, th, w2, c), lambda i, j: (i, j, 0, 0)),
            # one-row halo: block size 1 along H => block index == element row index.
            # max(j*th - 1, 0) fetches the row above the block, and at the image top
            # it degenerates to row 0 == the replication pad.
            pl.BlockSpec((1, 1, w2, c),
                         lambda i, j: (i, jnp.maximum(j * th - 1, 0), 0, 0)),
        ],
        out_specs=pl.BlockSpec((1, th, w2, c), lambda i, j: (i, j, 0, 0)),
        compiler_params=pltpu.CompilerParams(
            dimension_semantics=("parallel", "parallel"),
            vmem_limit_bytes=32 * 1024 * 1024,
        ),
    )(ps_nhwc, ps_nhwc)


# ----------------------------------------------------------------------------
# Module forward
# ----------------------------------------------------------------------------
def custom_pixel_shuffle_icnr_forward(x_nchw, params, *, scale=2, blur=True,
                                      tile_m=1024, tile_h=None):
    """x: (N, ni, H, W) -> (N, nf, scale*H, scale*W), matching the PyTorch forward."""
    n, ci, h, w = x_nchw.shape
    w_eff = params["weight"]                       # (Cout, Cin) spectrally-normalized 1x1 weight
    bias = params["bias"]                          # (Cout,)
    cout = w_eff.shape[0]
    nf = cout // (scale * scale)

    # NCHW -> NHWC -> (M, Cin) slab (layout glue).
    x_mc = jnp.transpose(x_nchw, (0, 2, 3, 1)).reshape(n * h * w, ci)

    # Pallas kernel 1: 1x1 conv + bias + ReLU.
    y = _conv1x1_relu(x_mc, jnp.transpose(w_eff), bias, tile_m=tile_m)   # (M, Cout) f32

    # PixelShuffle (pure layout): conv channel k = c*scale^2 + i*scale + j.
    y = y.reshape(n, h, w, nf, scale, scale)
    y = jnp.transpose(y, (0, 1, 4, 2, 5, 3))                             # (N, H, s, W, s, nf)
    ps = y.reshape(n, h * scale, w * scale, nf)                          # upsampled NHWC

    out_nhwc = _pixelshuffle_blur(ps, tile_h=tile_h) if blur else ps
    return jnp.transpose(out_nhwc, (0, 3, 1, 2))                         # NHWC -> NCHW


# ----------------------------------------------------------------------------
# Parameter preparation (plain JAX; mirrors the module's state at forward time)
# ----------------------------------------------------------------------------
def init_pixel_shuffle_icnr_params(key, ni, nf, scale=2):
    cout = nf * scale * scale
    # init_default: kaiming_normal_ on the (cout, ni, 1, 1) conv weight (fan_in = ni); bias -> 0.
    std = (2.0 / ni) ** 0.5
    w0 = jax.random.normal(key, (cout, ni), jnp.float32) * std
    # NB: the module also calls icnr() on conv.weight, but spectral_norm recomputes
    # weight = weight_orig / sigma on every forward, so the forward-time weight is the
    # spectrally-normalized kaiming weight.  We reproduce the converged spectral norm.
    sigma = _spectral_sigma(w0)
    return {"weight": w0 / sigma, "bias": jnp.zeros((cout,), jnp.float32)}


# ----------------------------------------------------------------------------
# Pure-JAX reference (f32) for correctness checking
# ----------------------------------------------------------------------------
def _ref_forward(x_nchw, w_eff, bias, *, scale=2, do_blur=True):
    n, ci, h, w = x_nchw.shape
    cout = w_eff.shape[0]
    nf = cout // (scale * scale)

    y = jnp.einsum("nchw,kc->nkhw", x_nchw, w_eff) + bias.reshape(1, -1, 1, 1)
    y = jnp.maximum(y, 0.0)
    # PixelShuffle (NCHW)
    y = y.reshape(n, nf, scale, scale, h, w)
    y = jnp.transpose(y, (0, 1, 4, 2, 5, 3)).reshape(n, nf, h * scale, w * scale)
    if do_blur:
        yp = jnp.pad(y, ((0, 0), (0, 0), (1, 0), (1, 0)), mode="edge")
        y = 0.25 * (yp[:, :, 1:, 1:] + yp[:, :, :-1, 1:]
                    + yp[:, :, 1:, :-1] + yp[:, :, :-1, :-1])
    return y


if __name__ == "__main__":
    key = jax.random.PRNGKey(0)
    kx, kw = jax.random.split(key)

    N, NI, H, W = 2, 16, 16, 16
    NF, SCALE = 32, 2          # Cout = NF * SCALE^2 = 128 -> lane-dense conv output

    x = jax.random.normal(kx, (N, NI, H, W), jnp.float32)
    params = init_pixel_shuffle_icnr_params(kw, NI, NF, scale=SCALE)

    # tile_m / tile_h chosen small so the demo exercises multi-tile grids + row halo.
    y = custom_pixel_shuffle_icnr_forward(x, params, scale=SCALE, blur=True,
                                          tile_m=128, tile_h=8)
    y = jax.block_until_ready(y)

    y_ref = _ref_forward(x, params["weight"], params["bias"], scale=SCALE, do_blur=True)
    y_ref = jax.block_until_ready(y_ref)

    assert y.shape == (N, NF, H * SCALE, W * SCALE), y.shape
    max_err = float(jnp.max(jnp.abs(y - y_ref)))
    # bf16 MXU operands (f32 accumulation) -> loosened tolerance vs the f32 reference.
    assert jnp.allclose(y, y_ref, atol=2e-2, rtol=2e-2), max_err

    print("KERNEL_OK")
</pallas_src>

<mosaic_0001>
module attributes {stable_mosaic.version = 11 : i64} {
  func.func @_conv1x1_relu_kernel(%arg0: i32, %arg1: memref<128x16xbf16, #tpu.memory_space<vmem>>, %arg2: memref<16x128xbf16, #tpu.memory_space<vmem>>, %arg3: memref<1x128xf32, #tpu.memory_space<vmem>>, %arg4: memref<128x128xf32, #tpu.memory_space<vmem>>) attributes {dimension_semantics = [#tpu.dimension_semantics<parallel>], iteration_bounds = array<i64: 4>, scalar_prefetch = 0 : i64, scratch_operands = 0 : i64, tpu.core_type = #tpu.core_type<tc>, window_params = [{transform_indices = @transform_0, window_bounds = array<i64: 128, 16>}, {pipeline_mode = #tpu.pipeline_mode<synchronous>, transform_indices = @transform_1, window_bounds = array<i64: 16, 128>}, {pipeline_mode = #tpu.pipeline_mode<synchronous>, transform_indices = @transform_2, window_bounds = array<i64: 1, 128>}, {transform_indices = @transform_3, window_bounds = array<i64: 128, 128>}]} {
    %c0 = arith.constant 0 : index
    %c0_0 = arith.constant 0 : index
    %0 = vector.load %arg1[%c0, %c0_0] : memref<128x16xbf16, #tpu.memory_space<vmem>>, vector<128x16xbf16>
    %c0_1 = arith.constant 0 : index
    %c0_2 = arith.constant 0 : index
    %1 = vector.load %arg2[%c0_1, %c0_2] : memref<16x128xbf16, #tpu.memory_space<vmem>>, vector<16x128xbf16>
    %cst = arith.constant dense<0.000000e+00> : vector<128x128xf32>
    %2 = tpu.matmul %0, %1, %cst {dimension_numbers = #tpu.dot_dimension_numbers<[1], [0], [0], [1], [0, 0, 1, 1], [], []>} : vector<128x16xbf16>, vector<16x128xbf16>, vector<128x128xf32> -> vector<128x128xf32>
    %c0_3 = arith.constant 0 : index
    %c0_4 = arith.constant 0 : index
    %3 = vector.load %arg3[%c0_3, %c0_4] : memref<1x128xf32, #tpu.memory_space<vmem>>, vector<1x128xf32>
    %4 = vector.broadcast %3 : vector<1x128xf32> to vector<128x128xf32>
    %5 = arith.addf %2, %4 : vector<128x128xf32>
    %cst_5 = arith.constant 0.000000e+00 : f32
    %6 = vector.broadcast %cst_5 : f32 to vector<128x128xf32>
    %7 = arith.maximumf %5, %6 : vector<128x128xf32>
    %c0_6 = arith.constant 0 : index
    %c0_7 = arith.constant 0 : index
    %8 = vector.load %arg4[%c0_6, %c0_7] : memref<128x128xf32, #tpu.memory_space<vmem>>, vector<128x128xf32>
    tpu.vector_store %arg4[%c0_6, %c0_7], %7 {strides = array<i32>} : memref<128x128xf32, #tpu.memory_space<vmem>>, vector<128x128xf32>,
    return
  }
  func.func @transform_0(%arg0: i32) -> (i32, i32) {
    %c0_i32 = arith.constant 0 : i32
    %c0_i32_0 = arith.constant 0 : i32
    return %arg0, %c0_i32 : i32, i32
  }
  func.func @transform_1(%arg0: i32) -> (i32, i32) {
    %c0_i32 = arith.constant 0 : i32
    %c0_i32_0 = arith.constant 0 : i32
    %c0_i32_1 = arith.constant 0 : i32
    return %c0_i32, %c0_i32_0 : i32, i32
  }
  func.func @transform_2(%arg0: i32) -> (i32, i32) {
    %c0_i32 = arith.constant 0 : i32
    %c0_i32_0 = arith.constant 0 : i32
    %c0_i32_1 = arith.constant 0 : i32
    return %c0_i32, %c0_i32_0 : i32, i32
  }
  func.func @transform_3(%arg0: i32) -> (i32, i32) {
    %c0_i32 = arith.constant 0 : i32
    %c0_i32_0 = arith.constant 0 : i32
    return %arg0, %c0_i32 : i32, i32
  }
}

</mosaic_0001>

<bundles_post_ra>
// kernel: tpu_custom_call.1
= control target key start
LH: loop header
LB: loop body
LE: loop exit
PB: predicated region body
PF: predicated region fallthrough
CT: control target
= control target key end

     0   :  { %8 = vsyncpa [#allocation3], 0  ;;  %s761_s0 = inlined_call_operand.vmem [shape: bf16[512,16], index: 0, kind: input, shape index: {}]   ;;  %s762_s1 = inlined_call_operand.vmem [shape: bf16[16,128], index: 1, kind: input, shape index: {}]   ;;  %s763_s2 = inlined_call_operand.vmem [shape: f32[1,128], index: 2, kind: input, shape index: {}]   ;;  %s764_s3 = inlined_call_operand.hbm [shape: f32[512,128], index: 3, kind: output, shape index: {}]  }
   0x1   :  { %10 = vsyncpa [#allocation3 + $0x1], 0  ;;  %s622_s12 = smov 0   ;;  %s624_s13 = smov 0  }
   0x2   :  { %s626_s14 = smov 0   ;;  %s628_s15 = smov 0  }
   0x3 LB: > { %s643_s16 = sadd.s32 4294967295, %s598_s15   ;;  %s425_s17 = sadd.s32 4294967294, %s598_s15   ;;  %s598_s15 = sphi %s628_s15, %s770_s15   ;;  %s594_s14 = sphi %s626_s14, %s769_s14   ;;  %s590_s13 = sphi %s624_s13, %s768_s13   ;;  %s586_s12 = sphi %s622_s12, %s767_s12  }
   0x4   : > { %s647_s18 = sadd.s32 1, %s598_s15   ;;  %s91_s19 = sadd.s32 1, %s594_s14 }
   0x5   : > { %s88_s20 = ssub.s32 %s598_s15, %s647_s18  ;;  %p101_p0 = scmp.ne.s32.totalorder %s594_s14, %s590_s13 }
   0x6   : > { %p89_p1 = scmp.eq.s32.totalorder %s88_s20, 0  ;;  %p102_p2 = scmp.eq.s32.totalorder %s643_s16, 3 }
   0x7   : > { %p107_p3 = scmp.ne.s32.totalorder %s590_s13, %s586_s12  ;;  %p108_p4 = scmp.eq.s32.totalorder %s425_s17, 3 }
   0x8   : > { %s658_s21 = scalar_select %p89_p1, %s594_s14, %s91_s19  }
   0x9   : > { %p660_p5 = por %p102_p2, %p101_p0  ;;  %p664_p6 = por %p108_p4, %p107_p3 }
   0xa   : > { %p428_p7 = scmp.ge.s32.totalorder %s598_s15, 1  ;;  %p141_p8 = scmp.lt.s32.totalorder %s598_s15, 5 }
   0xc   : > { %p142_p9 = pnand %p428_p7, %p141_p8 }
   0xd   : > { %s430_s26 = sshll.u32 (!%p142_p9), %s643_s16, 4  ;;  %s162_s4 = sand.u32 (!%p142_p9), 1, %s590_s13  }
   0xe   : > { %145 = sbr.rel (%p142_p9) target bundleno = 189 (0xbd), region = 32  ;;  %p166_p10 = scmp.lt.s32.totalorder (!%p142_p9), %s430_s26, 63 }
   0xf   : > { %s429_s7 = sshll.u32 (!%p142_p9), %s162_s4, 7  ;;  %s490_s9 = sshll.u32 (!%p142_p9), %s643_s16, 7 }
  0x10   : > { %s695_s8 = scalar_lea.vmem (!%p142_p9), [#allocation2], %s429_s7  ;;  %s359_s17 = scalar_lea.hbm (!%p142_p9), %s764_s3, %s490_s9 }
  0x11   : > { %s360_s19 = sshll.u32 (!%p142_p9), %s695_s8, 4  ;;  %s362_s16 = sshll.u32 (!%p142_p9), %s359_s17, 4  ;;  %s361_s19 = int_to_ptr.vmem [resolvable:$true] %s360_s19  ;;  %s363_s16 = int_to_ptr.hbm [resolvable:$true] %s362_s16 }
  0x12   : > { %s348_s20 = scalar_lea.sflag (!%p142_p9), [#allocation3], %s162_s4  ;;  %s550_s24 = sshra.s32 (!%p142_p9), %s363_s16, 4  ;;  %s551_s24 = int_to_ptr.hbm [resolvable:$true] %s550_s24 }
  0x13   : > { %v489_v0 = vld [vmem:[%s762_s1] sm:$0xff]  ;;  %s772_s26 = smov (!%p166_p10, %s430_s26), 63  ;;  %vm241_vm0 = vcmask 130048   ;;  %s552_s25 = scalar_lea.hbm %s551_s24, 128 }
  0x14   : > { %273 = vmatpush.bf16.msra.mxu0 %v489_v0  ;;  %491 = vmatpush.bf16.msra.mxu1 %v489_v0  ;;  %s431_s27 = sshll.u32 %s772_s26, 2  ;;  %v689_v9 = vld [vmem:[%s763_s2] ss:$0 sm:$0xff]  ;;  %p553_p11 = scmp.ne.s32.totalorder %s551_s24, %s552_s25 }
  0x15   : > { %492 = vmatpush.bf16.msra.mxu2 %v489_v0  ;;  %493 = vmatpush.bf16.msra.mxu3 %v489_v0  ;;  %s169_s30 = scalar_lea.vmem %s761_s0, %s431_s27  ;;  %s556_s28 = scalar_lea.hbm %s764_s3, 512 }
  0x16   : > { %v481_v1 = vld [vmem:[%s169_s30] sm:$0xff]  ;;  %v483_v2 = vld [vmem:[%s169_s30 + $0x10] sm:$0xff]  ;;  %v482_v5 = vld [vmem:[%s169_s30 + $0x8] sm:$0xff]  ;;  %p554_p12 = pnand %p553_p11, %p660_p5  ;;  %p557_p0 = scmp.lt.s32.totalorder %s551_s24, %s764_s3 }
  0x17   : > { %v485_v3 = vld [vmem:[%s169_s30 + $0x20] sm:$0xff]  ;;  %v487_v4 = vld [vmem:[%s169_s30 + $0x30] sm:$0xff]  ;;  %468 = vmatmul.msk.bf16.vlgmr.msra.gmra.mxu0 %vm241_vm0, %v481_v1  ;;  %470 = vmatmul.msk.bf16.vlgmr.msra.gmra.mxu1 %vm241_vm0, %v483_v2  ;;  %v484_v6 = vld [vmem:[%s169_s30 + $0x18] sm:$0xff]  ;;  %p558_p1 = scmp.lt.s32.totalorder %s556_s28, %s552_s25 }
  0x18   : > { %472 = vmatmul.msk.bf16.vlgmr.msra.gmra.mxu2 %vm241_vm0, %v485_v3  ;;  %474 = vmatmul.msk.bf16.vlgmr.msra.gmra.mxu3 %vm241_vm0, %v487_v4  ;;  %v486_v7 = vld [vmem:[%s169_s30 + $0x28] sm:$0xff]  ;;  %v488_v8 = vld [vmem:[%s169_s30 + $0x38] sm:$0xff]  ;;  %p555_p13 = pneg %p554_p12 }
  0x19   : > { %p559_p2 = por %p558_p1, %p557_p0 }
  0x1b   : > { %p560_p3 = pnand %p559_p2, %p555_p13 }
  0x27   : > { %469 = vmatmul.msk.bf16.gmra.mxu0 %vm241_vm0, %v482_v5  ;;  %471 = vmatmul.msk.bf16.gmra.mxu1 %vm241_vm0, %v484_v6 }
  0x28   : > { %473 = vmatmul.msk.bf16.gmra.mxu2 %vm241_vm0, %v486_v7  ;;  %475 = vmatmul.msk.bf16.gmra.mxu3 %vm241_vm0, %v488_v8 }
  0x94   : > { %v275_v10 = vpop.f32.mrf.mxu0  ;;  %v285_v11 = vpop.f32.mrf.mxu1 }
  0x95   : > { %v276_v12 = vadd.f32 %v689_v9, %v275_v10  ;;  %v286_v13 = vadd.f32 %v689_v9, %v285_v11 }
  0x97   : > { %v315_v14 = vmax.f32 %v276_v12, 0.0  ;;  %v319_v15 = vmax.f32 %v286_v13, 0.0 }
  0x99   : > { %331 = vst [vmem:[%s695_s8] sm:$0xff] %v315_v14 }
  0x9a   : > { %335 = vst [vmem:[%s695_s8 + $0x20] sm:$0xff] %v319_v15 }
  0x9b   : > { %v295_v16 = vpop.f32.mrf.mxu2  ;;  %v305_v17 = vpop.f32.mrf.mxu3 }
  0x9c   : > { %v296_v18 = vadd.f32 %v689_v9, %v295_v16  ;;  %v306_v19 = vadd.f32 %v689_v9, %v305_v17  ;;  %v277_v20 = vpop.f32.mrf.mxu0  ;;  %v287_v21 = vpop.f32.mrf.mxu1 }
  0x9d   : > { %v278_v22 = vadd.f32 %v689_v9, %v277_v20  ;;  %v288_v23 = vadd.f32 %v689_v9, %v287_v21 }
  0x9e   : > { %v323_v24 = vmax.f32 %v296_v18, 0.0  ;;  %v327_v25 = vmax.f32 %v306_v19, 0.0 }
  0x9f   : > { %v316_v26 = vmax.f32 %v278_v22, 0.0  ;;  %v320_v27 = vmax.f32 %v288_v23, 0.0 }
  0xa0   : > { %339 = vst [vmem:[%s695_s8 + $0x40] sm:$0xff] %v323_v24 }
  0xa1   : > { %343 = vst [vmem:[%s695_s8 + $0x60] sm:$0xff] %v327_v25 }
  0xa2   : > { %332 = vst [vmem:[%s695_s8 + $0x8] sm:$0xff] %v316_v26 }
  0xa3   : > { %336 = vst [vmem:[%s695_s8 + $0x28] sm:$0xff] %v320_v27  ;;  %v297_v28 = vpop.f32.mrf.mxu2  ;;  %v307_v29 = vpop.f32.mrf.mxu3 }
  0xa4   : > { %v298_v30 = vadd.f32 %v689_v9, %v297_v28  ;;  %v308_v31 = vadd.f32 %v689_v9, %v307_v29  ;;  %v280_v32 = vpop.f32.mrf.mxu0  ;;  %v290_v33 = vpop.f32.mrf.mxu1 }
  0xa5   : > { %v281_v34 = vadd.f32 %v689_v9, %v280_v32  ;;  %v291_v35 = vadd.f32 %v689_v9, %v290_v33 }
  0xa6   : > { %v324_v36 = vmax.f32 %v298_v30, 0.0  ;;  %v328_v37 = vmax.f32 %v308_v31, 0.0 }
  0xa7   : > { %v317_v38 = vmax.f32 %v281_v34, 0.0  ;;  %v321_v39 = vmax.f32 %v291_v35, 0.0 }
  0xa8   : > { %340 = vst [vmem:[%s695_s8 + $0x48] sm:$0xff] %v324_v36 }
  0xa9   : > { %344 = vst [vmem:[%s695_s8 + $0x68] sm:$0xff] %v328_v37 }
  0xaa   : > { %333 = vst [vmem:[%s695_s8 + $0x10] sm:$0xff] %v317_v38 }
  0xab   : > { %337 = vst [vmem:[%s695_s8 + $0x30] sm:$0xff] %v321_v39  ;;  %v300_v40 = vpop.f32.mrf.mxu2  ;;  %v310_v41 = vpop.f32.mrf.mxu3 }
  0xac   : > { %v301_v42 = vadd.f32 %v689_v9, %v300_v40  ;;  %v311_v43 = vadd.f32 %v689_v9, %v310_v41  ;;  %v282_v44 = vpop.f32.mrf.mxu0  ;;  %v292_v45 = vpop.f32.mrf.mxu1 }
  0xad   : > { %v283_v46 = vadd.f32 %v689_v9, %v282_v44  ;;  %v293_v47 = vadd.f32 %v689_v9, %v292_v45 }
  0xae   : > { %v325_v48 = vmax.f32 %v301_v42, 0.0  ;;  %v329_v49 = vmax.f32 %v311_v43, 0.0 }
  0xaf   : > { %v318_v50 = vmax.f32 %v283_v46, 0.0  ;;  %v322_v51 = vmax.f32 %v293_v47, 0.0 }
  0xb0   : > { %341 = vst [vmem:[%s695_s8 + $0x50] sm:$0xff] %v325_v48 }
  0xb1   : > { %345 = vst [vmem:[%s695_s8 + $0x70] sm:$0xff] %v329_v49 }
  0xb2   : > { %334 = vst [vmem:[%s695_s8 + $0x18] sm:$0xff] %v318_v50 }
  0xb3   : > { %338 = vst [vmem:[%s695_s8 + $0x38] sm:$0xff] %v322_v51  ;;  %v302_v52 = vpop.f32.mrf.mxu2  ;;  %v312_v53 = vpop.f32.mrf.mxu3 }
  0xb4   : > { %v303_v54 = vadd.f32 %v689_v9, %v302_v52  ;;  %v313_v55 = vadd.f32 %v689_v9, %v312_v53 }
  0xb6   : > { %v326_v56 = vmax.f32 %v303_v54, 0.0  ;;  %v330_v57 = vmax.f32 %v313_v55, 0.0 }
  0xb8   : > { %342 = vst [vmem:[%s695_s8 + $0x58] sm:$0xff] %v326_v56 }
  0xb9   : > { %346 = vst [vmem:[%s695_s8 + $0x78] sm:$0xff] %v330_v57 }
  0xba   : > { %563 = shalt.err (!%p560_p3)
}
  0xbb   : > { %s600_s4 = smov 128   ;;  %s601_s5 = smov 8  }
  0xbc   : > { %494 = dma.vmem_to_hbm [thread:$0]  (%p660_p5), %s361_s19, 2048, %s363_s16, %s348_s20, %s600_s4, %s600_s4, %s601_s5  }
  0xbd PF: > { %p500_p4 = scmp.ge.s32.totalorder %s598_s15, 2  ;;  %s377_s6 = sand.u32 1, %s586_s12  }
  0xbe   : > { %s378_s7 = scalar_lea.sflag [#allocation3], %s377_s6 }
  0xbf   : > { %p497_p7 = pnand %p500_p4, %p664_p6 }
  0xc1   : > { %p498_p8 = pneg %p497_p7 }
  0xc3   : > { %581 = dma.done.wait (%p498_p8), %s378_s7, 2048  }
  0xc4   : > { %583 = vsyncadd (%p498_p8), %s378_s7, 4294965248  ;;  %p13_p9 = scmp.ge.s32.totalorder %s647_s18, 6   ;;  %s767_s12 = smov %s590_s13 }
  0xc5   : > { %s768_s13 = smov %s594_s14  ;;  %s769_s14 = smov %s658_s21 }
  0xc6   : > { %s770_s15 = smov %s647_s18  ;;  %15 = sbr.rel (!%p13_p9) target bundleno = 3 (0x3), region = 67 }
  0xcb   :  { %384 = vsyncpa [#allocation3], 1 }
  0xcc   :  { %386 = vsyncpa [#allocation3 + $0x1], 1 }

</bundles_post_ra>
